<compile_context>
chip_gen: v7x
topology: tpu7x:2x2x1
jax: 0.10.0
libtpu: 0.0.40
codegen_flags: <defaults>
</compile_context>

<pallas_src>
import jax
import jax.numpy as jnp
from jax.experimental import pallas as pl
from jax.experimental.pallas import tpu as pltpu

EPS = 1e-5  # PyTorch BatchNorm2d default


def basic_block_forward(x_nchw, params):
    """Pallas BasicBlock forward.  x_nchw: (N, C, H, W) f32, stride=1,
    downsample=None (inplanes == planes), BatchNorm in inference mode."""
    N, C, H, W = x_nchw.shape
    HW = H * W
    PAD = W + 1  # flat-index pad so every tap shift (|s| <= W+1) stays in range

    # NCHW -> (N, C, H*W): free reshape; channels on sublanes, pixels on lanes.
    x_flat = x_nchw.reshape(N, C, HW)

    # Conv weights OIHW -> (Cout, 9*Cin) bf16 so that weight column tap*C + ci
    # matches patch row tap*C + ci (tap = ky*3 + kx).
    def flat_w(w):
        return jnp.transpose(w, (0, 2, 3, 1)).reshape(C, 9 * C).astype(jnp.bfloat16)

    w1k = flat_w(params["w1"])
    w2k = flat_w(params["w2"])

    # Fold eval-mode BatchNorm (running stats) into per-output-channel
    # scale/shift shaped (C, 1) to broadcast along the lane (pixel) axis.
    def fold_bn(g, b, m, v):
        s = g / jnp.sqrt(v + EPS)
        return s.reshape(C, 1), (b - m * s).reshape(C, 1)

    s1, b1 = fold_bn(params["g1"], params["b1"], params["m1"], params["v1"])
    s2, b2 = fold_bn(params["g2"], params["b2"], params["m2"], params["v2"])

    def kernel(x_ref, w1_ref, w2_ref, s1_ref, b1_ref, s2_ref, b2_ref,
               out_ref, xpad_ref, y1pad_ref, patch_ref):
        # x_ref:              (1, C, HW)        f32   one image, pixels-minor
        # w1_ref/w2_ref:      (C, 9C)           bf16  fused conv taps
        # s*/b*:              (C, 1)            f32   folded BN scale / shift
        # out_ref:            (1, C, HW)        f32   lane-dense output block
        # xpad_ref/y1pad_ref: (C, HW + 2*PAD)   f32   flat zero-padded slabs
        # patch_ref:          (9C, HW)          f32   im2col patch matrix
        x = x_ref[0]                                          # (C, HW) f32

        # Column masks for the dx = +-1 taps (row-wrap in the flat pixel index).
        col = jax.lax.broadcasted_iota(jnp.int32, (C, HW), 1) % W
        mask_l = col >= 1            # dx = -1 valid
        mask_r = col < (W - 1)       # dx = +1 valid

        # Bulk-zero the tiny pad slabs and drop the image in the middle; the
        # W+1 zero lanes on each side absorb row under/overflow of every tap.
        xpad_ref[...] = jnp.zeros_like(xpad_ref)
        y1pad_ref[...] = jnp.zeros_like(y1pad_ref)
        xpad_ref[:, pl.ds(PAD, HW)] = x

        def conv3x3_bn(pad_ref, w_ref, s_ref, b_ref):
            # Build the (9C, HW) im2col matrix: tap (dy, dx) is the padded slab
            # sliced at static lane offset PAD + dy*W + dx; dx = +-1 taps are
            # masked where the flat shift wraps across a row boundary.
            for dy in (-1, 0, 1):
                for dx in (-1, 0, 1):
                    tap = (dy + 1) * 3 + (dx + 1)
                    sh = pad_ref[:, pl.ds(PAD + dy * W + dx, HW)]   # (C, HW)
                    if dx == -1:
                        sh = jnp.where(mask_l, sh, 0.0)
                    elif dx == 1:
                        sh = jnp.where(mask_r, sh, 0.0)
                    patch_ref[pl.ds(tap * C, C), :] = sh
            # One K = 9C contraction per conv on the MXU: bf16 operands (single
            # cast of the whole patch matrix), f32 accumulation, then folded BN.
            y = jnp.dot(w_ref[...], patch_ref[...].astype(jnp.bfloat16),
                        preferred_element_type=jnp.float32)          # (C, HW) f32
            return y * s_ref[...] + b_ref[...]

        # conv1 -> bn1 -> relu
        y1 = jnp.maximum(conv3x3_bn(xpad_ref, w1_ref, s1_ref, b1_ref), 0.0)
        y1pad_ref[:, pl.ds(PAD, HW)] = y1

        # conv2 -> bn2 -> +residual -> relu (residual in f32, lane-dense store)
        y2 = conv3x3_bn(y1pad_ref, w2_ref, s2_ref, b2_ref)
        out_ref[...] = jnp.maximum(y2 + x, 0.0).reshape(1, C, HW)

    out_flat = pl.pallas_call(
        kernel,
        out_shape=jax.ShapeDtypeStruct((N, C, HW), jnp.float32),
        grid=(N,),  # one image per step; N=2 "parallel" keeps both v7x TCs busy
        in_specs=[
            pl.BlockSpec((1, C, HW), lambda n: (n, 0, 0)),
            pl.BlockSpec((C, 9 * C), lambda n: (0, 0)),
            pl.BlockSpec((C, 9 * C), lambda n: (0, 0)),
            pl.BlockSpec((C, 1), lambda n: (0, 0)),
            pl.BlockSpec((C, 1), lambda n: (0, 0)),
            pl.BlockSpec((C, 1), lambda n: (0, 0)),
            pl.BlockSpec((C, 1), lambda n: (0, 0)),
        ],
        out_specs=pl.BlockSpec((1, C, HW), lambda n: (n, 0, 0)),
        scratch_shapes=[
            pltpu.VMEM((C, HW + 2 * PAD), jnp.float32),   # flat-padded input
            pltpu.VMEM((C, HW + 2 * PAD), jnp.float32),   # flat-padded conv1 act
            pltpu.VMEM((9 * C, HW), jnp.float32),         # im2col patch matrix
        ],
        compiler_params=pltpu.CompilerParams(
            dimension_semantics=("parallel",)),
    )(x_flat, w1k, w2k, s1, b1, s2, b2)

    return out_flat.reshape(N, C, H, W)


def basic_block_reference(x_nchw, params):
    """Pure-JAX reference: eval-mode BasicBlock with the same numerics policy
    as the kernel (bf16 conv operands, f32 accumulation, f32 BN/ReLU/residual)."""
    def conv(x, w):
        return jax.lax.conv_general_dilated(
            x.astype(jnp.bfloat16), w.astype(jnp.bfloat16),
            window_strides=(1, 1), padding=((1, 1), (1, 1)),
            dimension_numbers=("NCHW", "OIHW", "NCHW"),
            preferred_element_type=jnp.float32)

    def bn(x, g, b, m, v):
        g = g[None, :, None, None]; b = b[None, :, None, None]
        m = m[None, :, None, None]; v = v[None, :, None, None]
        return (x - m) / jnp.sqrt(v + EPS) * g + b

    out = jax.nn.relu(bn(conv(x_nchw, params["w1"]),
                         params["g1"], params["b1"], params["m1"], params["v1"]))
    out = bn(conv(out, params["w2"]),
             params["g2"], params["b2"], params["m2"], params["v2"])
    return jax.nn.relu(out + x_nchw)


def make_params(key, planes):
    ks = jax.random.split(key, 10)
    C = planes
    return {
        "w1": jax.random.normal(ks[0], (C, C, 3, 3), jnp.float32) * 0.1,
        "w2": jax.random.normal(ks[1], (C, C, 3, 3), jnp.float32) * 0.1,
        "g1": jax.random.uniform(ks[2], (C,), jnp.float32, 0.5, 1.5),
        "b1": jax.random.normal(ks[3], (C,), jnp.float32) * 0.1,
        "m1": jax.random.normal(ks[4], (C,), jnp.float32) * 0.1,
        "v1": jax.random.uniform(ks[5], (C,), jnp.float32, 0.5, 1.5),
        "g2": jax.random.uniform(ks[6], (C,), jnp.float32, 0.5, 1.5),
        "b2": jax.random.normal(ks[7], (C,), jnp.float32) * 0.1,
        "m2": jax.random.normal(ks[8], (C,), jnp.float32) * 0.1,
        "v2": jax.random.uniform(ks[9], (C,), jnp.float32, 0.5, 1.5),
    }


if __name__ == "__main__":
    # BasicBlock(inplanes=4, planes=4, stride=1, downsample=None)
    N, C, H, W = 2, 4, 16, 16
    key = jax.random.PRNGKey(0)
    k_x, k_p = jax.random.split(key)
    x = jax.random.normal(k_x, (N, C, H, W), jnp.float32)
    params = make_params(k_p, C)

    fwd = jax.jit(basic_block_forward)
    out = jax.block_until_ready(fwd(x, params))
    ref = jax.block_until_ready(basic_block_reference(x, params))

    assert out.shape == (N, C, H, W)
    # Both sides use identically bf16-rounded conv operands with f32
    # accumulation, so only accumulation-order differences remain.
    err = jnp.max(jnp.abs(out - ref))
    assert jnp.allclose(out, ref, atol=1e-3, rtol=1e-3), f"max abs err {err}"
    print("KERNEL_OK")
</pallas_src>

<mosaic_0001>
module attributes {stable_mosaic.version = 11 : i64} {
  func.func @kernel(%arg0: i32, %arg1: memref<1x4x256xf32, #tpu.memory_space<vmem>>, %arg2: memref<4x36xbf16, #tpu.memory_space<vmem>>, %arg3: memref<4x36xbf16, #tpu.memory_space<vmem>>, %arg4: memref<4x1xf32, #tpu.memory_space<vmem>>, %arg5: memref<4x1xf32, #tpu.memory_space<vmem>>, %arg6: memref<4x1xf32, #tpu.memory_space<vmem>>, %arg7: memref<4x1xf32, #tpu.memory_space<vmem>>, %arg8: memref<1x4x256xf32, #tpu.memory_space<vmem>>, %arg9: memref<4x290xf32, #tpu.memory_space<vmem>>, %arg10: memref<4x290xf32, #tpu.memory_space<vmem>>, %arg11: memref<36x256xf32, #tpu.memory_space<vmem>>) attributes {dimension_semantics = [#tpu.dimension_semantics<parallel>], iteration_bounds = array<i64: 2>, scalar_prefetch = 0 : i64, scratch_operands = 3 : i64, tpu.core_type = #tpu.core_type<tc>, window_params = [{transform_indices = @transform_0, window_bounds = array<i64: 1, 4, 256>}, {pipeline_mode = #tpu.pipeline_mode<synchronous>, transform_indices = @transform_1, window_bounds = array<i64: 4, 36>}, {pipeline_mode = #tpu.pipeline_mode<synchronous>, transform_indices = @transform_2, window_bounds = array<i64: 4, 36>}, {pipeline_mode = #tpu.pipeline_mode<synchronous>, transform_indices = @transform_3, window_bounds = array<i64: 4, 1>}, {pipeline_mode = #tpu.pipeline_mode<synchronous>, transform_indices = @transform_4, window_bounds = array<i64: 4, 1>}, {pipeline_mode = #tpu.pipeline_mode<synchronous>, transform_indices = @transform_5, window_bounds = array<i64: 4, 1>}, {pipeline_mode = #tpu.pipeline_mode<synchronous>, transform_indices = @transform_6, window_bounds = array<i64: 4, 1>}, {transform_indices = @transform_7, window_bounds = array<i64: 1, 4, 256>}]} {
    %c0 = arith.constant 0 : index
    %c0_0 = arith.constant 0 : index
    %c0_1 = arith.constant 0 : index
    %0 = vector.load %arg1[%c0, %c0_0, %c0_1] : memref<1x4x256xf32, #tpu.memory_space<vmem>>, vector<1x4x256xf32>
    %1 = vector.shape_cast %0 : vector<1x4x256xf32> to vector<4x256xf32>
    %2 = tpu.iota {dimensions = array<i32: 1>} : vector<4x256xi32>
    %c16_i32 = arith.constant 16 : i32
    %c0_i32 = arith.constant 0 : i32
    %3 = arith.cmpi eq, %c16_i32, %c0_i32 : i32
    %c1_i32 = arith.constant 1 : i32
    %4 = arith.select %3, %c1_i32, %c16_i32 : i32
    %5 = vector.broadcast %4 : i32 to vector<4x256xi32>
    %6 = arith.remsi %2, %5 : vector<4x256xi32>
    %c0_i32_2 = arith.constant 0 : i32
    %7 = vector.broadcast %c0_i32_2 : i32 to vector<4x256xi32>
    %8 = arith.cmpi ne, %6, %7 : vector<4x256xi32>
    %c0_i32_3 = arith.constant 0 : i32
    %9 = vector.broadcast %c0_i32_3 : i32 to vector<4x256xi32>
    %10 = arith.cmpi slt, %6, %9 : vector<4x256xi32>
    %c0_i32_4 = arith.constant 0 : i32
    %11 = arith.cmpi slt, %4, %c0_i32_4 : i32
    %12 = vector.broadcast %11 : i1 to vector<4x256xi1>
    %13 = vector.broadcast %12 : vector<4x256xi1> to vector<4x256xi1>
    %14 = arith.xori %10, %13 : vector<4x256xi1>
    %15 = arith.andi %14, %8 : vector<4x256xi1>
    %16 = vector.broadcast %4 : i32 to vector<4x256xi32>
    %17 = arith.addi %6, %16 : vector<4x256xi32>
    %18 = arith.select %15, %17, %6 : vector<4x256xi1>, vector<4x256xi32>
    %c1_i32_5 = arith.constant 1 : i32
    %19 = vector.broadcast %c1_i32_5 : i32 to vector<4x256xi32>
    %20 = arith.cmpi sge, %18, %19 : vector<4x256xi32>
    %c15_i32 = arith.constant 15 : i32
    %21 = vector.broadcast %c15_i32 : i32 to vector<4x256xi32>
    %22 = arith.cmpi slt, %18, %21 : vector<4x256xi32>
    %cst = arith.constant 0.000000e+00 : f32
    %23 = vector.broadcast %cst : f32 to vector<4x290xf32>
    %c0_6 = arith.constant 0 : index
    %c0_7 = arith.constant 0 : index
    %24 = vector.load %arg9[%c0_6, %c0_7] : memref<4x290xf32, #tpu.memory_space<vmem>>, vector<4x290xf32>
    tpu.vector_store %arg9[%c0_6, %c0_7], %23 {strides = array<i32>} : memref<4x290xf32, #tpu.memory_space<vmem>>, vector<4x290xf32>,
    %cst_8 = arith.constant 0.000000e+00 : f32
    %25 = vector.broadcast %cst_8 : f32 to vector<4x290xf32>
    %c0_9 = arith.constant 0 : index
    %c0_10 = arith.constant 0 : index
    %26 = vector.load %arg10[%c0_9, %c0_10] : memref<4x290xf32, #tpu.memory_space<vmem>>, vector<4x290xf32>
    tpu.vector_store %arg10[%c0_9, %c0_10], %25 {strides = array<i32>} : memref<4x290xf32, #tpu.memory_space<vmem>>, vector<4x290xf32>,
    %c0_11 = arith.constant 0 : index
    %c17 = arith.constant 17 : index
    %27 = vector.load %arg9[%c0_11, %c17] : memref<4x290xf32, #tpu.memory_space<vmem>>, vector<4x256xf32>
    tpu.vector_store %arg9[%c0_11, %c17], %1 {strides = array<i32>} : memref<4x290xf32, #tpu.memory_space<vmem>>, vector<4x256xf32>,
    %c0_12 = arith.constant 0 : index
    %c0_13 = arith.constant 0 : index
    %28 = vector.load %arg9[%c0_12, %c0_13] : memref<4x290xf32, #tpu.memory_space<vmem>>, vector<4x256xf32>
    %cst_14 = arith.constant 0.000000e+00 : f32
    %29 = vector.broadcast %cst_14 : f32 to vector<4x256xf32>
    %30 = arith.select %20, %28, %29 : vector<4x256xi1>, vector<4x256xf32>
    %c0_15 = arith.constant 0 : index
    %c0_16 = arith.constant 0 : index
    %31 = vector.load %arg11[%c0_15, %c0_16] : memref<36x256xf32, #tpu.memory_space<vmem>>, vector<4x256xf32>
    tpu.vector_store %arg11[%c0_15, %c0_16], %30 {strides = array<i32>} : memref<36x256xf32, #tpu.memory_space<vmem>>, vector<4x256xf32>,
    %c0_17 = arith.constant 0 : index
    %c1 = arith.constant 1 : index
    %32 = vector.load %arg9[%c0_17, %c1] : memref<4x290xf32, #tpu.memory_space<vmem>>, vector<4x256xf32>
    %c4 = arith.constant 4 : index
    %c0_18 = arith.constant 0 : index
    %33 = vector.load %arg11[%c4, %c0_18] : memref<36x256xf32, #tpu.memory_space<vmem>>, vector<4x256xf32>
    tpu.vector_store %arg11[%c4, %c0_18], %32 {strides = array<i32>} : memref<36x256xf32, #tpu.memory_space<vmem>>, vector<4x256xf32>,
    %c0_19 = arith.constant 0 : index
    %c2 = arith.constant 2 : index
    %34 = vector.load %arg9[%c0_19, %c2] : memref<4x290xf32, #tpu.memory_space<vmem>>, vector<4x256xf32>
    %cst_20 = arith.constant 0.000000e+00 : f32
    %35 = vector.broadcast %cst_20 : f32 to vector<4x256xf32>
    %36 = arith.select %22, %34, %35 : vector<4x256xi1>, vector<4x256xf32>
    %c8 = arith.constant 8 : index
    %c0_21 = arith.constant 0 : index
    %37 = vector.load %arg11[%c8, %c0_21] : memref<36x256xf32, #tpu.memory_space<vmem>>, vector<4x256xf32>
    tpu.vector_store %arg11[%c8, %c0_21], %36 {strides = array<i32>} : memref<36x256xf32, #tpu.memory_space<vmem>>, vector<4x256xf32>,
    %c0_22 = arith.constant 0 : index
    %c16 = arith.constant 16 : index
    %38 = vector.load %arg9[%c0_22, %c16] : memref<4x290xf32, #tpu.memory_space<vmem>>, vector<4x256xf32>
    %cst_23 = arith.constant 0.000000e+00 : f32
    %39 = vector.broadcast %cst_23 : f32 to vector<4x256xf32>
    %40 = arith.select %20, %38, %39 : vector<4x256xi1>, vector<4x256xf32>
    %c12 = arith.constant 12 : index
    %c0_24 = arith.constant 0 : index
    %41 = vector.load %arg11[%c12, %c0_24] : memref<36x256xf32, #tpu.memory_space<vmem>>, vector<4x256xf32>
    tpu.vector_store %arg11[%c12, %c0_24], %40 {strides = array<i32>} : memref<36x256xf32, #tpu.memory_space<vmem>>, vector<4x256xf32>,
    %c0_25 = arith.constant 0 : index
    %c17_26 = arith.constant 17 : index
    %42 = vector.load %arg9[%c0_25, %c17_26] : memref<4x290xf32, #tpu.memory_space<vmem>>, vector<4x256xf32>
    %c16_27 = arith.constant 16 : index
    %c0_28 = arith.constant 0 : index
    %43 = vector.load %arg11[%c16_27, %c0_28] : memref<36x256xf32, #tpu.memory_space<vmem>>, vector<4x256xf32>
    tpu.vector_store %arg11[%c16_27, %c0_28], %42 {strides = array<i32>} : memref<36x256xf32, #tpu.memory_space<vmem>>, vector<4x256xf32>,
    %c0_29 = arith.constant 0 : index
    %c18 = arith.constant 18 : index
    %44 = vector.load %arg9[%c0_29, %c18] : memref<4x290xf32, #tpu.memory_space<vmem>>, vector<4x256xf32>
    %cst_30 = arith.constant 0.000000e+00 : f32
    %45 = vector.broadcast %cst_30 : f32 to vector<4x256xf32>
    %46 = arith.select %22, %44, %45 : vector<4x256xi1>, vector<4x256xf32>
    %c20 = arith.constant 20 : index
    %c0_31 = arith.constant 0 : index
    %47 = vector.load %arg11[%c20, %c0_31] : memref<36x256xf32, #tpu.memory_space<vmem>>, vector<4x256xf32>
    tpu.vector_store %arg11[%c20, %c0_31], %46 {strides = array<i32>} : memref<36x256xf32, #tpu.memory_space<vmem>>, vector<4x256xf32>,
    %c0_32 = arith.constant 0 : index
    %c32 = arith.constant 32 : index
    %48 = vector.load %arg9[%c0_32, %c32] : memref<4x290xf32, #tpu.memory_space<vmem>>, vector<4x256xf32>
    %cst_33 = arith.constant 0.000000e+00 : f32
    %49 = vector.broadcast %cst_33 : f32 to vector<4x256xf32>
    %50 = arith.select %20, %48, %49 : vector<4x256xi1>, vector<4x256xf32>
    %c24 = arith.constant 24 : index
    %c0_34 = arith.constant 0 : index
    %51 = vector.load %arg11[%c24, %c0_34] : memref<36x256xf32, #tpu.memory_space<vmem>>, vector<4x256xf32>
    tpu.vector_store %arg11[%c24, %c0_34], %50 {strides = array<i32>} : memref<36x256xf32, #tpu.memory_space<vmem>>, vector<4x256xf32>,
    %c0_35 = arith.constant 0 : index
    %c33 = arith.constant 33 : index
    %52 = vector.load %arg9[%c0_35, %c33] : memref<4x290xf32, #tpu.memory_space<vmem>>, vector<4x256xf32>
    %c28 = arith.constant 28 : index
    %c0_36 = arith.constant 0 : index
    %53 = vector.load %arg11[%c28, %c0_36] : memref<36x256xf32, #tpu.memory_space<vmem>>, vector<4x256xf32>
    tpu.vector_store %arg11[%c28, %c0_36], %52 {strides = array<i32>} : memref<36x256xf32, #tpu.memory_space<vmem>>, vector<4x256xf32>,
    %c0_37 = arith.constant 0 : index
    %c34 = arith.constant 34 : index
    %54 = vector.load %arg9[%c0_37, %c34] : memref<4x290xf32, #tpu.memory_space<vmem>>, vector<4x256xf32>
    %cst_38 = arith.constant 0.000000e+00 : f32
    %55 = vector.broadcast %cst_38 : f32 to vector<4x256xf32>
    %56 = arith.select %22, %54, %55 : vector<4x256xi1>, vector<4x256xf32>
    %c32_39 = arith.constant 32 : index
    %c0_40 = arith.constant 0 : index
    %57 = vector.load %arg11[%c32_39, %c0_40] : memref<36x256xf32, #tpu.memory_space<vmem>>, vector<4x256xf32>
    tpu.vector_store %arg11[%c32_39, %c0_40], %56 {strides = array<i32>} : memref<36x256xf32, #tpu.memory_space<vmem>>, vector<4x256xf32>,
    %c0_41 = arith.constant 0 : index
    %c0_42 = arith.constant 0 : index
    %58 = vector.load %arg2[%c0_41, %c0_42] : memref<4x36xbf16, #tpu.memory_space<vmem>>, vector<4x36xbf16>
    %c0_43 = arith.constant 0 : index
    %c0_44 = arith.constant 0 : index
    %59 = vector.load %arg11[%c0_43, %c0_44] : memref<36x256xf32, #tpu.memory_space<vmem>>, vector<36x256xf32>
    %60 = arith.truncf %59 : vector<36x256xf32> to vector<36x256xbf16>
    %cst_45 = arith.constant dense<0.000000e+00> : vector<4x256xf32>
    %61 = tpu.matmul %58, %60, %cst_45 {dimension_numbers = #tpu.dot_dimension_numbers<[1], [0], [0], [1], [0, 0, 1, 1], [], []>} : vector<4x36xbf16>, vector<36x256xbf16>, vector<4x256xf32> -> vector<4x256xf32>
    %c0_46 = arith.constant 0 : index
    %c0_47 = arith.constant 0 : index
    %62 = vector.load %arg4[%c0_46, %c0_47] : memref<4x1xf32, #tpu.memory_space<vmem>>, vector<4x1xf32>
    %63 = vector.broadcast %62 : vector<4x1xf32> to vector<4x256xf32>
    %64 = arith.mulf %61, %63 : vector<4x256xf32>
    %c0_48 = arith.constant 0 : index
    %c0_49 = arith.constant 0 : index
    %65 = vector.load %arg5[%c0_48, %c0_49] : memref<4x1xf32, #tpu.memory_space<vmem>>, vector<4x1xf32>
    %66 = vector.broadcast %65 : vector<4x1xf32> to vector<4x256xf32>
    %67 = arith.addf %64, %66 : vector<4x256xf32>
    %cst_50 = arith.constant 0.000000e+00 : f32
    %68 = vector.broadcast %cst_50 : f32 to vector<4x256xf32>
    %69 = arith.maximumf %67, %68 : vector<4x256xf32>
    %c0_51 = arith.constant 0 : index
    %c17_52 = arith.constant 17 : index
    %70 = vector.load %arg10[%c0_51, %c17_52] : memref<4x290xf32, #tpu.memory_space<vmem>>, vector<4x256xf32>
    tpu.vector_store %arg10[%c0_51, %c17_52], %69 {strides = array<i32>} : memref<4x290xf32, #tpu.memory_space<vmem>>, vector<4x256xf32>,
    %c0_53 = arith.constant 0 : index
    %c0_54 = arith.constant 0 : index
    %71 = vector.load %arg10[%c0_53, %c0_54] : memref<4x290xf32, #tpu.memory_space<vmem>>, vector<4x256xf32>
    %cst_55 = arith.constant 0.000000e+00 : f32
    %72 = vector.broadcast %cst_55 : f32 to vector<4x256xf32>
    %73 = arith.select %20, %71, %72 : vector<4x256xi1>, vector<4x256xf32>
    %c0_56 = arith.constant 0 : index
    %c0_57 = arith.constant 0 : index
    %74 = vector.load %arg11[%c0_56, %c0_57] : memref<36x256xf32, #tpu.memory_space<vmem>>, vector<4x256xf32>
    tpu.vector_store %arg11[%c0_56, %c0_57], %73 {strides = array<i32>} : memref<36x256xf32, #tpu.memory_space<vmem>>, vector<4x256xf32>,
    %c0_58 = arith.constant 0 : index
    %c1_59 = arith.constant 1 : index
    %75 = vector.load %arg10[%c0_58, %c1_59] : memref<4x290xf32, #tpu.memory_space<vmem>>, vector<4x256xf32>
    %c4_60 = arith.constant 4 : index
    %c0_61 = arith.constant 0 : index
    %76 = vector.load %arg11[%c4_60, %c0_61] : memref<36x256xf32, #tpu.memory_space<vmem>>, vector<4x256xf32>
    tpu.vector_store %arg11[%c4_60, %c0_61], %75 {strides = array<i32>} : memref<36x256xf32, #tpu.memory_space<vmem>>, vector<4x256xf32>,
    %c0_62 = arith.constant 0 : index
    %c2_63 = arith.constant 2 : index
    %77 = vector.load %arg10[%c0_62, %c2_63] : memref<4x290xf32, #tpu.memory_space<vmem>>, vector<4x256xf32>
    %cst_64 = arith.constant 0.000000e+00 : f32
    %78 = vector.broadcast %cst_64 : f32 to vector<4x256xf32>
    %79 = arith.select %22, %77, %78 : vector<4x256xi1>, vector<4x256xf32>
    %c8_65 = arith.constant 8 : index
    %c0_66 = arith.constant 0 : index
    %80 = vector.load %arg11[%c8_65, %c0_66] : memref<36x256xf32, #tpu.memory_space<vmem>>, vector<4x256xf32>
    tpu.vector_store %arg11[%c8_65, %c0_66], %79 {strides = array<i32>} : memref<36x256xf32, #tpu.memory_space<vmem>>, vector<4x256xf32>,
    %c0_67 = arith.constant 0 : index
    %c16_68 = arith.constant 16 : index
    %81 = vector.load %arg10[%c0_67, %c16_68] : memref<4x290xf32, #tpu.memory_space<vmem>>, vector<4x256xf32>
    %cst_69 = arith.constant 0.000000e+00 : f32
    %82 = vector.broadcast %cst_69 : f32 to vector<4x256xf32>
    %83 = arith.select %20, %81, %82 : vector<4x256xi1>, vector<4x256xf32>
    %c12_70 = arith.constant 12 : index
    %c0_71 = arith.constant 0 : index
    %84 = vector.load %arg11[%c12_70, %c0_71] : memref<36x256xf32, #tpu.memory_space<vmem>>, vector<4x256xf32>
    tpu.vector_store %arg11[%c12_70, %c0_71], %83 {strides = array<i32>} : memref<36x256xf32, #tpu.memory_space<vmem>>, vector<4x256xf32>,
    %c0_72 = arith.constant 0 : index
    %c17_73 = arith.constant 17 : index
    %85 = vector.load %arg10[%c0_72, %c17_73] : memref<4x290xf32, #tpu.memory_space<vmem>>, vector<4x256xf32>
    %c16_74 = arith.constant 16 : index
    %c0_75 = arith.constant 0 : index
    %86 = vector.load %arg11[%c16_74, %c0_75] : memref<36x256xf32, #tpu.memory_space<vmem>>, vector<4x256xf32>
    tpu.vector_store %arg11[%c16_74, %c0_75], %85 {strides = array<i32>} : memref<36x256xf32, #tpu.memory_space<vmem>>, vector<4x256xf32>,
    %c0_76 = arith.constant 0 : index
    %c18_77 = arith.constant 18 : index
    %87 = vector.load %arg10[%c0_76, %c18_77] : memref<4x290xf32, #tpu.memory_space<vmem>>, vector<4x256xf32>
    %cst_78 = arith.constant 0.000000e+00 : f32
    %88 = vector.broadcast %cst_78 : f32 to vector<4x256xf32>
    %89 = arith.select %22, %87, %88 : vector<4x256xi1>, vector<4x256xf32>
    %c20_79 = arith.constant 20 : index
    %c0_80 = arith.constant 0 : index
    %90 = vector.load %arg11[%c20_79, %c0_80] : memref<36x256xf32, #tpu.memory_space<vmem>>, vector<4x256xf32>
    tpu.vector_store %arg11[%c20_79, %c0_80], %89 {strides = array<i32>} : memref<36x256xf32, #tpu.memory_space<vmem>>, vector<4x256xf32>,
    %c0_81 = arith.constant 0 : index
    %c32_82 = arith.constant 32 : index
    %91 = vector.load %arg10[%c0_81, %c32_82] : memref<4x290xf32, #tpu.memory_space<vmem>>, vector<4x256xf32>
    %cst_83 = arith.constant 0.000000e+00 : f32
    %92 = vector.broadcast %cst_83 : f32 to vector<4x256xf32>
    %93 = arith.select %20, %91, %92 : vector<4x256xi1>, vector<4x256xf32>
    %c24_84 = arith.constant 24 : index
    %c0_85 = arith.constant 0 : index
    %94 = vector.load %arg11[%c24_84, %c0_85] : memref<36x256xf32, #tpu.memory_space<vmem>>, vector<4x256xf32>
    tpu.vector_store %arg11[%c24_84, %c0_85], %93 {strides = array<i32>} : memref<36x256xf32, #tpu.memory_space<vmem>>, vector<4x256xf32>,
    %c0_86 = arith.constant 0 : index
    %c33_87 = arith.constant 33 : index
    %95 = vector.load %arg10[%c0_86, %c33_87] : memref<4x290xf32, #tpu.memory_space<vmem>>, vector<4x256xf32>
    %c28_88 = arith.constant 28 : index
    %c0_89 = arith.constant 0 : index
    %96 = vector.load %arg11[%c28_88, %c0_89] : memref<36x256xf32, #tpu.memory_space<vmem>>, vector<4x256xf32>
    tpu.vector_store %arg11[%c28_88, %c0_89], %95 {strides = array<i32>} : memref<36x256xf32, #tpu.memory_space<vmem>>, vector<4x256xf32>,
    %c0_90 = arith.constant 0 : index
    %c34_91 = arith.constant 34 : index
    %97 = vector.load %arg10[%c0_90, %c34_91] : memref<4x290xf32, #tpu.memory_space<vmem>>, vector<4x256xf32>
    %cst_92 = arith.constant 0.000000e+00 : f32
    %98 = vector.broadcast %cst_92 : f32 to vector<4x256xf32>
    %99 = arith.select %22, %97, %98 : vector<4x256xi1>, vector<4x256xf32>
    %c32_93 = arith.constant 32 : index
    %c0_94 = arith.constant 0 : index
    %100 = vector.load %arg11[%c32_93, %c0_94] : memref<36x256xf32, #tpu.memory_space<vmem>>, vector<4x256xf32>
    tpu.vector_store %arg11[%c32_93, %c0_94], %99 {strides = array<i32>} : memref<36x256xf32, #tpu.memory_space<vmem>>, vector<4x256xf32>,
    %c0_95 = arith.constant 0 : index
    %c0_96 = arith.constant 0 : index
    %101 = vector.load %arg3[%c0_95, %c0_96] : memref<4x36xbf16, #tpu.memory_space<vmem>>, vector<4x36xbf16>
    %c0_97 = arith.constant 0 : index
    %c0_98 = arith.constant 0 : index
    %102 = vector.load %arg11[%c0_97, %c0_98] : memref<36x256xf32, #tpu.memory_space<vmem>>, vector<36x256xf32>
    %103 = arith.truncf %102 : vector<36x256xf32> to vector<36x256xbf16>
    %cst_99 = arith.constant dense<0.000000e+00> : vector<4x256xf32>
    %104 = tpu.matmul %101, %103, %cst_99 {dimension_numbers = #tpu.dot_dimension_numbers<[1], [0], [0], [1], [0, 0, 1, 1], [], []>} : vector<4x36xbf16>, vector<36x256xbf16>, vector<4x256xf32> -> vector<4x256xf32>
    %c0_100 = arith.constant 0 : index
    %c0_101 = arith.constant 0 : index
    %105 = vector.load %arg6[%c0_100, %c0_101] : memref<4x1xf32, #tpu.memory_space<vmem>>, vector<4x1xf32>
    %106 = vector.broadcast %105 : vector<4x1xf32> to vector<4x256xf32>
    %107 = arith.mulf %104, %106 : vector<4x256xf32>
    %c0_102 = arith.constant 0 : index
    %c0_103 = arith.constant 0 : index
    %108 = vector.load %arg7[%c0_102, %c0_103] : memref<4x1xf32, #tpu.memory_space<vmem>>, vector<4x1xf32>
    %109 = vector.broadcast %108 : vector<4x1xf32> to vector<4x256xf32>
    %110 = arith.addf %107, %109 : vector<4x256xf32>
    %111 = arith.addf %110, %1 : vector<4x256xf32>
    %cst_104 = arith.constant 0.000000e+00 : f32
    %112 = vector.broadcast %cst_104 : f32 to vector<4x256xf32>
    %113 = arith.maximumf %111, %112 : vector<4x256xf32>
    %114 = vector.shape_cast %113 : vector<4x256xf32> to vector<1x4x256xf32>
    %c0_105 = arith.constant 0 : index
    %c0_106 = arith.constant 0 : index
    %c0_107 = arith.constant 0 : index
    %115 = vector.load %arg8[%c0_105, %c0_106, %c0_107] : memref<1x4x256xf32, #tpu.memory_space<vmem>>, vector<1x4x256xf32>
    tpu.vector_store %arg8[%c0_105, %c0_106, %c0_107], %114 {strides = array<i32>} : memref<1x4x256xf32, #tpu.memory_space<vmem>>, vector<1x4x256xf32>,
    return
  }
  func.func @transform_0(%arg0: i32) -> (i32, i32, i32) {
    %c0_i32 = arith.constant 0 : i32
    %c0_i32_0 = arith.constant 0 : i32
    %c0_i32_1 = arith.constant 0 : i32
    return %arg0, %c0_i32, %c0_i32_0 : i32, i32, i32
  }
  func.func @transform_1(%arg0: i32) -> (i32, i32) {
    %c0_i32 = arith.constant 0 : i32
    %c0_i32_0 = arith.constant 0 : i32
    %c0_i32_1 = arith.constant 0 : i32
    return %c0_i32, %c0_i32_0 : i32, i32
  }
  func.func @transform_2(%arg0: i32) -> (i32, i32) {
    %c0_i32 = arith.constant 0 : i32
    %c0_i32_0 = arith.constant 0 : i32
    %c0_i32_1 = arith.constant 0 : i32
    return %c0_i32, %c0_i32_0 : i32, i32
  }
  func.func @transform_3(%arg0: i32) -> (i32, i32) {
    %c0_i32 = arith.constant 0 : i32
    %c0_i32_0 = arith.constant 0 : i32
    %c0_i32_1 = arith.constant 0 : i32
    return %c0_i32, %c0_i32_0 : i32, i32
  }
  func.func @transform_4(%arg0: i32) -> (i32, i32) {
    %c0_i32 = arith.constant 0 : i32
    %c0_i32_0 = arith.constant 0 : i32
    %c0_i32_1 = arith.constant 0 : i32
    return %c0_i32, %c0_i32_0 : i32, i32
  }
  func.func @transform_5(%arg0: i32) -> (i32, i32) {
    %c0_i32 = arith.constant 0 : i32
    %c0_i32_0 = arith.constant 0 : i32
    %c0_i32_1 = arith.constant 0 : i32
    return %c0_i32, %c0_i32_0 : i32, i32
  }
  func.func @transform_6(%arg0: i32) -> (i32, i32) {
    %c0_i32 = arith.constant 0 : i32
    %c0_i32_0 = arith.constant 0 : i32
    %c0_i32_1 = arith.constant 0 : i32
    return %c0_i32, %c0_i32_0 : i32, i32
  }
  func.func @transform_7(%arg0: i32) -> (i32, i32, i32) {
    %c0_i32 = arith.constant 0 : i32
    %c0_i32_0 = arith.constant 0 : i32
    %c0_i32_1 = arith.constant 0 : i32
    return %arg0, %c0_i32, %c0_i32_0 : i32, i32, i32
  }
}

</mosaic_0001>

<bundles_post_ra>
// kernel: basic_block_forward.1
= control target key start
LH: loop header
LB: loop body
LE: loop exit
PB: predicated region body
PF: predicated region fallthrough
CT: control target
= control target key end

     0   :  { %s1028_s24 = smov 0   ;;  %s1255_s0 = inlined_call_operand.vmem [shape: f32[2,4,256], index: 0, kind: input, shape index: {}]   ;;  %s1256_s1 = inlined_call_operand.vmem [shape: bf16[4,36], index: 1, kind: input, shape index: {}]   ;;  %s1257_s2 = inlined_call_operand.vmem [shape: bf16[4,36], index: 2, kind: input, shape index: {}]   ;;  %s1258_s3 = inlined_call_operand.vmem [shape: f32[4,1], index: 3, kind: input, shape index: {}]   ;;  %s1259_s4 = inlined_call_operand.vmem [shape: f32[4,1], index: 4, kind: input, shape index: {}]   ;;  %s1260_s5 = inlined_call_operand.vmem [shape: f32[4,1], index: 5, kind: input, shape index: {}]   ;;  %s1261_s6 = inlined_call_operand.vmem [shape: f32[4,1], index: 6, kind: input, shape index: {}]   ;;  %s1262_s7 = inlined_call_operand.vmem [shape: f32[2,4,256], index: 7, kind: output, shape index: {}]  }
   0x1 LB: > { %s922_s25 = sadd.s32 4294967295, %s975_s24   ;;  %p926_p0 = scmp.ge.s32.totalorder %s975_s24, 1  ;;  %s975_s24 = sphi %s1028_s24, %s17_s24  }
   0x2   : > { %p237_p1 = scmp.lt.s32.totalorder %s975_s24, 3 }
   0x4   : > { %p238_p2 = pnand %p926_p0, %p237_p1 }
   0x5   : > { %p269_p3 = scmp.lt.s32.totalorder (!%p238_p2), %s922_s25, 1  ;;  %vm313_vm0 = vcmask (!%p238_p2), 273408   ;;  %v977_v0 = vmov (!%p238_p2), 0.0   ;;  %s978_s30 = smov (!%p238_p2), 17   ;;  %v281_v2 = vlaneseq (!%p238_p2)  ;;  %vm325_vm1 = vcmask (!%p238_p2), 1043592  }
   0x6   : > { %241 = sbr.rel (%p238_p2) target bundleno = 1064 (0x428), region = 48  ;;  %312 = vst [vmem:[#allocation2] sm:$0xff] (!%p238_p2), %v977_v0  ;;  %314 = vst.msk [vmem:[#allocation2 + $0x8] sm:$0xf] (!%p238_p2), %vm313_vm0, %v977_v0  ;;  %vm326_vm2 = vcmask (!%p238_p2), 1047556   ;;  %vm321_vm3 = vcmask (!%p238_p2), 138240  }
   0x7   : > { %315 = vst [vmem:[#allocation3] sm:$0xff] (!%p238_p2), %v977_v0  ;;  %316 = vst.msk [vmem:[#allocation3 + $0x8] sm:$0xf] (!%p238_p2), %vm313_vm0, %v977_v0  ;;  %v1048_v3 = vand.u32 (!%p238_p2), 127, %v281_v2  ;;  %vm329_vm4 = vcmask (!%p238_p2), 134144   ;;  %s979_s8 = smov (!%p238_p2), 96  }
   0x8   : > { %vm1050_vm5 = vmor (!%p238_p2), %vm326_vm2, %vm325_vm1  ;;  %s980_s9 = smov (!%p238_p2), 112   ;;  %s981_s10 = smov (!%p238_p2), 111   ;;  %v987_v26 = vmov (!%p238_p2), 0   ;;  %v576_v27 = vld [vmem:[%s1258_s3] sm:$0xf] (!%p238_p2)  ;;  %vm351_vm8 = vcmask (!%p238_p2), 1039360  }
   0x9   : > { %v1057_v8 = vadd.s32 (!%p238_p2), 128, %v1048_v3  ;;  %v288_v9 = vand.u32 (!%p238_p2), 15, %v1048_v3  ;;  %s982_s11 = smov (!%p238_p2), 126   ;;  %s983_s12 = smov (!%p238_p2), 110   ;;  %567 = vmatprep.mubr.bf16.mxu0 (!%p238_p2), %v987_v26  ;;  %958 = vset.pattern.permute.xlu1 (!%p238_p2), %v987_v26  ;;  %v584_v28 = vld [vmem:[%s1259_s4] sm:$0xf] (!%p238_p2) }
   0xa   : > { %s984_s13 = smov (!%p238_p2), 127   ;;  %s985_s14 = smov (!%p238_p2), 95   ;;  %959 = vset.pattern.permute.xlu0 (!%p238_p2), %v987_v26  ;;  %831 = vmatprep.mubr.bf16.mxu1 (!%p238_p2), %v987_v26  ;;  %vm480_vm9 = vcmask (!%p238_p2), 777216   ;;  %vm389_vm10 = vcmask (!%p238_p2), 916480   ;;  %vm369_vm11 = vcmask (!%p238_p2), 1031168   ;;  %vm459_vm12 = vcmask (!%p238_p2), 785408  }
   0xb   : > { %v295_v10 = vand.u32 (!%p238_p2), 15, %v1057_v8  ;;  %vm1065_vm6 = vcmp.ge.s32.totalorder (!%p238_p2), %v288_v9, 1  ;;  %s986_s15 = smov (!%p238_p2), 94   ;;  %vm1120_vm13 = vcmp.lt.s32.totalorder (!%p238_p2), %v288_v9, 15  ;;  %vm433_vm15 = vcmask (!%p238_p2), 900096  }
   0xc   : > { %vm415_vm0 = vcmask (!%p238_p2), 908288   ;;  %vm1263_vm1 = vcmask (!%p238_p2), 769024   ;;  %vm528_vm2 = vcmask (!%p238_p2), 1041408   ;;  %v773_v55 = vld [vmem:[%s1257_s2] sm:$0x3] (!%p238_p2) }
   0xd   : > { %s1277_s25 = smov (!%p269_p3, %s922_s25), 1  ;;  %vm1073_vm7 = vcmp.ge.s32.totalorder %v295_v10, 1  ;;  %vm1126_vm14 = vcmp.lt.s32.totalorder %v295_v10, 15 }
   0xe   : > { %s937_s26 = sshll.u32 %s1277_s25, 3 }
   0xf   : > { %s273_s29 = scalar_lea.vmem %s1255_s0, %s937_s26 }
  0x10   : > { %v1044_v1 = vld [vmem:[%s273_s29] sm:$0xff] }
  0x11   : > { %318 = vrot.lane.b32.xlu0 %v1044_v1, %s978_s30 }
  0x83   : > { %v319_v4 = vpop.permute.xlu0 %318 }
  0x84   : > { %v320_v6 = vrot.slane %v319_v4, 4 }
  0x86   : > { %v322_v7 = vsel %vm321_vm3, %v320_v6, %v319_v4  ;;  %330 = vst.msk [vmem:[#allocation2 + $0x8] sm:$0xf] %vm329_vm4, %v320_v6 }
  0x87   : > { %328 = vst.msk [vmem:[#allocation2] sm:$0xff] %vm1050_vm5, %v322_v7 }
  0x8d   : > { %v449_v11 = vld [vmem:[#allocation2 + $0x8] sm:$0xf] }
  0x8e   : > { %v379_v12 = vld [vmem:[#allocation2 + $0x8] sm:$0xf]  ;;  %457 = vrot.lane.b32.xlu0 %v449_v11, %s979_s8  ;;  %v339_v14 = vld [vmem:[#allocation2] sm:$0xff] }
  0x8f   : > { %387 = vrot.lane.b32.xlu1 %v379_v12, %s980_s9  ;;  %v382_v16 = vcombine.high %v339_v14, %v339_v14  ;;  %v335_v17 = vsel %vm1065_vm6, %v339_v14, 0.0  ;;  %v405_v18 = vld [vmem:[#allocation2 + $0x8] sm:$0xf]  ;;  %v343_v24 = vcombine.low %v339_v14, %v339_v14 }
  0x90   : > { %v359_v19 = vld [vmem:[#allocation2 + $0x8] sm:$0xf]  ;;  %337 = vst [vmem:[#allocation4] sm:$0xf] %v335_v17 }
  0x91   : > { %v336_v20 = vsel %vm1073_vm7, %v382_v16, 0.0  ;;  %v423_v21 = vld [vmem:[#allocation2 + $0x8] sm:$0xf] }
  0x92   : > { %413 = vrot.lane.b32.xlu0 %v405_v18, %s981_s10  ;;  %338 = vst [vmem:[#allocation4 + $0x8] sm:$0xf] %v336_v20  ;;  %v963_v22 = vld [vmem:[#allocation2 + $0x8] ss:$0 sps:$4 sm:$0xff]  }
  0x93   : > { %367 = vrot.lane.b32.xlu1 %v359_v19, %s982_s11  ;;  %v964_v23 = vld [vmem:[#allocation2 + $0x8] ss:$0 sps:$4 sm:$0xff]  }
  0x94   : > { %v488_v25 = vld [vmem:[#allocation2 + $0x8] sm:$0xf] }
  0x96   : > { %347 = vrot.lane.b32.xlu0 %v339_v14, %s984_s13 }
  0x97   : > { %431 = vrot.lane.b32.xlu1 %v423_v21, %s983_s12 }
  0x9a   : > { %363 = vrot.lane.b32.xlu0 %v339_v14, %s982_s11 }
  0x9b   : > { %383 = vrot.lane.b32.xlu1 %v339_v14, %s980_s9 }
  0x9e   : > { %427 = vrot.lane.b32.xlu0 %v339_v14, %s983_s12 }
  0x9f   : > { %453 = vrot.lane.b32.xlu1 %v339_v14, %s979_s8 }
  0xa2   : > { %476 = vrot.lane.b32.xlu0 %v339_v14, %s985_s14 }
  0xa3   : > { %349 = vrot.lane.b32.xlu1 %v963_v22, %s984_s13 }
  0xa6   : > { %409 = vrot.lane.b32.xlu0 %v339_v14, %s981_s10 }
  0xa7   : > { %478 = vrot.lane.b32.xlu1 %v964_v23, %s985_s14 }
  0xaa   : > { %385 = vrot.lane.b32.xlu0 %v382_v16, %s980_s9 }
  0xab   : > { %345 = vrot.lane.b32.xlu1 %v343_v24, %s984_s13 }
  0xae   : > { %365 = vrot.lane.b32.xlu0 %v382_v16, %s982_s11 }
  0xaf   : > { %455 = vrot.lane.b32.xlu1 %v382_v16, %s979_s8 }
  0xb2   : > { %429 = vrot.lane.b32.xlu0 %v382_v16, %s983_s12 }
  0xb3   : > { %411 = vrot.lane.b32.xlu1 %v382_v16, %s981_s10 }
  0xb6   : > { %492 = vrot.lane.b32.xlu0 %v339_v14, %s986_s15 }
  0xb7   : > { %474 = vrot.lane.b32.xlu1 %v343_v24, %s985_s14 }
  0xba   : > { %496 = vrot.lane.b32.xlu0 %v488_v25, %s986_s15 }
  0xbb   : > { %494 = vrot.lane.b32.xlu1 %v382_v16, %s986_s15 }
  0xbe   : > { %587 = vperm.xlu0 %959, %v584_v28  }
  0xbf   : > { %579 = vperm.xlu1 %958, %v576_v27  }
 0x100   : > { %v458_v29 = vpop.permute.xlu0 %457 }
 0x101   : > { %v388_v30 = vpop.permute.xlu1 %387 }
 0x104   : > { %v414_v31 = vpop.permute.xlu0 %413 }
 0x105   : > { %v368_v32 = vpop.permute.xlu1 %367 }
 0x108   : > { %v348_v34 = vpop.permute.xlu0 %347 }
 0x109   : > { %v432_v33 = vpop.permute.xlu1 %431 }
 0x10c   : > { %v364_v36 = vpop.permute.xlu0 %363 }
 0x10d   : > { %v384_v35 = vpop.permute.xlu1 %383 }
 0x110   : > { %v428_v38 = vpop.permute.xlu0 %427 }
 0x111   : > { %v454_v37 = vpop.permute.xlu1 %453 }
 0x114   : > { %v477_v40 = vpop.permute.xlu0 %476 }
 0x115   : > { %v350_v39 = vpop.permute.xlu1 %349 }
 0x116   : > { %v353_v41 = vsel %vm351_vm8, %v348_v34, %v350_v39 }
 0x117   : > { %357 = vst [vmem:[#allocation4 + $0x8] sm:$0xf0] %v353_v41 }
 0x118   : > { %v410_v43 = vpop.permute.xlu0 %409 }
 0x119   : > { %v479_v42 = vpop.permute.xlu1 %478 }
 0x11a   : > { %v482_v44 = vsel %vm480_vm9, %v477_v40, %v479_v42  ;;  %v507_v42 = vld [vmem:[%s1256_s1] sm:$0x3] }
 0x11b   : > { %486 = vst [vmem:[#allocation4 + $0x38] sm:$0xf0] %v482_v44 }
 0x11c   : > { %v386_v45 = vpop.permute.xlu0 %385 }
 0x11d   : > { %v346_v46 = vpop.permute.xlu1 %345  ;;  %v390_v47 = vsel %vm389_vm10, %v384_v35, %v386_v45  ;;  %v391_v48 = vsel %vm389_vm10, %v386_v45, %v388_v30 }
 0x11e   : > { %v352_v49 = vsel %vm351_vm8, %v346_v46, %v348_v34  ;;  %v394_v50 = vsel %vm1065_vm6, %v390_v47, 0.0  ;;  %v395_v51 = vsel %vm1073_vm7, %v391_v48, 0.0  ;;  %v509_v19 = vld [vmem:[#allocation4 + $0x8] sm:$0xff] }
 0x11f   : > { %356 = vst [vmem:[#allocation4] sm:$0xf0] %v352_v49  ;;  %v398_v52 = vrot.slane %v394_v50, 4  ;;  %v399_v53 = vrot.slane %v395_v51, 4 }
 0x120   : > { %v366_v56 = vpop.permute.xlu0 %365 }
 0x121   : > { %v456_v57 = vpop.permute.xlu1 %455  ;;  %402 = vst [vmem:[#allocation4 + $0x10] sm:$0xf0] %v398_v52  ;;  %403 = vst [vmem:[#allocation4 + $0x18] sm:$0xf0] %v399_v53  ;;  %v370_v58 = vsel %vm369_vm11, %v364_v36, %v366_v56  ;;  %v371_v59 = vsel %vm369_vm11, %v366_v56, %v368_v32 }
 0x122   : > { %v460_v60 = vsel %vm459_vm12, %v454_v37, %v456_v57  ;;  %v461_v61 = vsel %vm459_vm12, %v456_v57, %v458_v29  ;;  %v374_v62 = vsel %vm1120_vm13, %v370_v58, 0.0  ;;  %v375_v63 = vsel %vm1126_vm14, %v371_v59, 0.0 }
 0x123   : > { %v464_v0 = vsel %vm1065_vm6, %v460_v60, 0.0  ;;  %v465_v2 = vsel %vm1073_vm7, %v461_v61, 0.0  ;;  %376 = vst [vmem:[#allocation4 + $0x10] sm:$0xf] %v374_v62  ;;  %377 = vst [vmem:[#allocation4 + $0x18] sm:$0xf] %v375_v63 }
 0x124   : > { %466 = vst [vmem:[#allocation4 + $0x30] sm:$0xf] %v464_v0  ;;  %467 = vst [vmem:[#allocation4 + $0x38] sm:$0xf] %v465_v2  ;;  %v430_v3 = vpop.permute.xlu0 %429 }
 0x125   : > { %v412_v4 = vpop.permute.xlu1 %411  ;;  %v434_v6 = vsel %vm433_vm15, %v428_v38, %v430_v3  ;;  %v435_v7 = vsel %vm433_vm15, %v430_v3, %v432_v33 }
 0x126   : > { %v416_v8 = vsel %vm415_vm0, %v410_v43, %v412_v4  ;;  %v417_v9 = vsel %vm415_vm0, %v412_v4, %v414_v31  ;;  %v438_v10 = vsel %vm1120_vm13, %v434_v6, 0.0  ;;  %v439_v11 = vsel %vm1126_vm14, %v435_v7, 0.0  ;;  %v508_v21 = vld [vmem:[#allocation4] sm:$0xff] }
 0x127   : > { %420 = vst [vmem:[#allocation4 + $0x20] sm:$0xf] %v416_v8  ;;  %421 = vst [vmem:[#allocation4 + $0x28] sm:$0xf] %v417_v9  ;;  %v442_v12 = vrot.slane %v438_v10, 4  ;;  %v443_v14 = vrot.slane %v439_v11, 4 }
 0x128   : > { %v493_v16 = vpop.permute.xlu0 %492  ;;  %v848_v11 = vld [vmem:[%s1261_s6] sm:$0xf] }
 0x129   : > { %v475_v17 = vpop.permute.xlu1 %474  ;;  %446 = vst [vmem:[#allocation4 + $0x20] sm:$0xf0] %v442_v12  ;;  %447 = vst [vmem:[#allocation4 + $0x28] sm:$0xf0] %v443_v14  ;;  %v840_v12 = vld [vmem:[%s1260_s5] sm:$0xf] }
 0x12a   : > { %v481_v18 = vsel %vm480_vm9, %v475_v17, %v477_v40  ;;  %v511_v20 = vld [vmem:[#allocation4 + $0x18] sm:$0xff]  ;;  %v510_v22 = vld [vmem:[#allocation4 + $0x10] sm:$0xff] }
 0x12b   : > { %485 = vst [vmem:[#allocation4 + $0x30] sm:$0xf0] %v481_v18  ;;  %v519_v23 = vpack.c.bf16 %v511_v20, %v509_v19  ;;  %v518_v24 = vpack.c.bf16 %v510_v22, %v508_v21  ;;  %v515_v32 = vld [vmem:[#allocation4 + $0x38] sm:$0xff] }
 0x12c   : > { %v497_v25 = vpop.permute.xlu0 %496 }
 0x12d   : > { %v495_v26 = vpop.permute.xlu1 %494  ;;  %535 = vmatprep.subr.bf16.mxu0 %v519_v23 }
 0x12e   : > { %v499_v27 = vsel %vm1263_vm1, %v493_v16, %v495_v26  ;;  %v500_v28 = vsel %vm1263_vm1, %v495_v26, %v497_v25  ;;  %536 = vmatpush1.bf16.msra.mxu0 %v518_v24  ;;  %vm524_vm1 = vcmask 293888  }
 0x12f   : > { %v503_v29 = vsel %vm1120_vm13, %v499_v27, 0.0  ;;  %v504_v30 = vsel %vm1126_vm14, %v500_v28, 0.0 }
 0x130   : > { %505 = vst [vmem:[#allocation4 + $0x40] sm:$0xf] %v503_v29  ;;  %506 = vst [vmem:[#allocation4 + $0x48] sm:$0xf] %v504_v30  ;;  %v513_v31 = vld [vmem:[#allocation4 + $0x28] sm:$0xff]  ;;  %v512_v33 = vld [vmem:[#allocation4 + $0x20] sm:$0xff] }
 0x131   : > { %v521_v34 = vpack.c.bf16 %v515_v32, %v513_v31 }
 0x132   : > { %v514_v35 = vld [vmem:[#allocation4 + $0x30] sm:$0xff] }
 0x133   : > { %v520_v36 = vpack.c.bf16 %v514_v35, %v512_v33  ;;  %537 = vmatprep.subr.bf16.mxu0 %v521_v34 }
 0x135   : > { %538 = vmatpush1.bf16.msra.mxu0 %v520_v36 }
 0x137   : > { %v517_v37 = vld [vmem:[#allocation4 + $0x48] sm:$0xf]  ;;  %v516_v38 = vld [vmem:[#allocation4 + $0x40] sm:$0xf] }
 0x138   : > { %v523_v39 = vpack.c.bf16 %v517_v37, %v517_v37  ;;  %v522_v40 = vpack.c.bf16 %v516_v38, %v516_v38 }
 0x13a   : > { %931 = vmatprep.subr.msk.bf16.mxu0 %vm528_vm2, %v523_v39  ;;  %v530_v41 = vsel %vm528_vm2, %v522_v40, 0 }
 0x13b   : > { %540 = vmatpush1.bf16.msra.mxu0 %v530_v41 }
 0x13d   : > { %v588_v45 = vpop.permute.xlu0 %587 }
 0x13e   : > { %932 = vmatmul.mubr.msk.bf16.vlgmr.msra.gmra.mrb[0].mxu0 %vm524_vm1, %v507_v42  ;;  %v580_v43 = vpop.permute.xlu1 %579 }
 0x211   : > { %v569_v44 = vpop.f32.mrb[0].mxu0 }
 0x212   : > { %v582_v46 = vmul.f32 %v580_v43, %v569_v44  ;;  %v571_v47 = vpop.f32.mrb[1].mxu0 }
 0x213   : > { %v583_v48 = vmul.f32 %v580_v43, %v571_v47  ;;  %v573_v49 = vpop.f32.mrb[2].mxu0 }
 0x214   : > { %v590_v50 = vadd.f32 %v588_v45, %v582_v46  ;;  %v574_v51 = vpop.f32.mrb[3].mxu0 }
 0x215   : > { %v591_v52 = vadd.f32 %v588_v45, %v583_v48 }
 0x216   : > { %v592_v53 = vmax.f32 %v590_v50, 0.0 }
 0x217   : > { %v593_v56 = vmax.f32 %v591_v52, 0.0 }
 0x219   : > { %v596_v57 = vcombine.low %v592_v53, %v593_v56 }
 0x21b   : > { %597 = vrot.lane.b32.xlu1 %v596_v57, %s978_s30 }
 0x28d   : > { %v598_v58 = vpop.permute.xlu1 %597 }
 0x28e   : > { %v599_v59 = vrot.slane %v598_v58, 4 }
 0x290   : > { %v600_v60 = vsel %vm321_vm3, %v599_v59, %v598_v58  ;;  %604 = vst.msk [vmem:[#allocation3 + $0x8] sm:$0xf] %vm329_vm4, %v599_v59  ;;  %vm1274_vm3 = vcmask 769024  }
 0x291   : > { %603 = vst.msk [vmem:[#allocation3] sm:$0xff] %vm1050_vm5, %v600_v60  ;;  %vm1275_vm4 = vmmov %vm1274_vm3 }
 0x297   : > { %v651_v61 = vld [vmem:[#allocation3 + $0x8] sm:$0xf] }
 0x298   : > { %v632_v62 = vld [vmem:[#allocation3 + $0x8] sm:$0xf]  ;;  %v605_v63 = vld [vmem:[#allocation3] sm:$0xff]  ;;  %659 = vrot.lane.b32.xlu0 %v651_v61, %s980_s9 }
 0x299   : > { %640 = vrot.lane.b32.xlu1 %v632_v62, %s982_s11  ;;  %v607_v0 = vcombine.high %v605_v63, %v605_v63  ;;  %v609_v2 = vsel %vm1065_vm6, %v605_v63, 0.0  ;;  %v718_v3 = vld [vmem:[#allocation3 + $0x8] sm:$0xf]  ;;  %v617_v9 = vcombine.low %v605_v63, %v605_v63 }
 0x29a   : > { %v693_v4 = vld [vmem:[#allocation3 + $0x8] sm:$0xf]  ;;  %611 = vst [vmem:[#allocation4] sm:$0xf] %v609_v2 }
 0x29b   : > { %v610_v6 = vsel %vm1073_vm7, %v607_v0, 0.0  ;;  %v676_v5 = vld [vmem:[#allocation3 + $0x8] sm:$0xf] }
 0x29c   : > { %726 = vrot.lane.b32.xlu0 %v718_v3, %s979_s8  ;;  %612 = vst [vmem:[#allocation4 + $0x8] sm:$0xf] %v610_v6  ;;  %v967_v7 = vld [vmem:[#allocation3 + $0x8] ss:$0 sps:$4 sm:$0xff]  }
 0x29d   : > { %701 = vrot.lane.b32.xlu1 %v693_v4, %s983_s12  ;;  %v968_v8 = vld [vmem:[#allocation3 + $0x8] ss:$0 sps:$4 sm:$0xff]  }
 0x29e   : > { %v755_v10 = vld [vmem:[#allocation3 + $0x8] sm:$0xf] }
 0x2a0   : > { %684 = vrot.lane.b32.xlu0 %v676_v5, %s981_s10 }
 0x2a1   : > { %655 = vrot.lane.b32.xlu1 %v605_v63, %s980_s9 }
 0x2a4   : > { %621 = vrot.lane.b32.xlu0 %v605_v63, %s984_s13 }
 0x2a5   : > { %722 = vrot.lane.b32.xlu1 %v605_v63, %s979_s8 }
 0x2a8   : > { %636 = vrot.lane.b32.xlu0 %v605_v63, %s982_s11 }
 0x2a9   : > { %623 = vrot.lane.b32.xlu1 %v967_v7, %s984_s13 }
 0x2ac   : > { %697 = vrot.lane.b32.xlu0 %v605_v63, %s983_s12 }
 0x2ad   : > { %746 = vrot.lane.b32.xlu1 %v968_v8, %s985_s14 }
 0x2b0   : > { %744 = vrot.lane.b32.xlu0 %v605_v63, %s985_s14 }
 0x2b1   : > { %657 = vrot.lane.b32.xlu1 %v607_v0, %s980_s9 }
 0x2b4   : > { %680 = vrot.lane.b32.xlu0 %v605_v63, %s981_s10 }
 0x2b5   : > { %619 = vrot.lane.b32.xlu1 %v617_v9, %s984_s13 }
 0x2b8   : > { %638 = vrot.lane.b32.xlu0 %v607_v0, %s982_s11 }
 0x2b9   : > { %724 = vrot.lane.b32.xlu1 %v607_v0, %s979_s8 }
 0x2bc   : > { %699 = vrot.lane.b32.xlu0 %v607_v0, %s983_s12 }
 0x2bd   : > { %682 = vrot.lane.b32.xlu1 %v607_v0, %s981_s10  ;;  %s278_s10 = scalar_lea.vmem %s1262_s7, %s937_s26 }
 0x2c0   : > { %759 = vrot.lane.b32.xlu0 %v605_v63, %s986_s15 }
 0x2c1   : > { %742 = vrot.lane.b32.xlu1 %v617_v9, %s985_s14 }
 0x2c4   : > { %763 = vrot.lane.b32.xlu0 %v755_v10, %s986_s15 }
 0x2c5   : > { %761 = vrot.lane.b32.xlu1 %v607_v0, %s986_s15 }
 0x2c8   : > { %851 = vperm.xlu0 %959, %v848_v11  }
 0x2c9   : > { %843 = vperm.xlu1 %958, %v840_v12  }
 0x30a   : > { %v660_v14 = vpop.permute.xlu0 %659 }
 0x30b   : > { %v641_v16 = vpop.permute.xlu1 %640 }
 0x30e   : > { %v727_v17 = vpop.permute.xlu0 %726 }
 0x30f   : > { %v702_v18 = vpop.permute.xlu1 %701 }
 0x312   : > { %v685_v19 = vpop.permute.xlu0 %684 }
 0x313   : > { %v656_v20 = vpop.permute.xlu1 %655 }
 0x316   : > { %v622_v22 = vpop.permute.xlu0 %621 }
 0x317   : > { %v723_v21 = vpop.permute.xlu1 %722 }
 0x31a   : > { %v637_v24 = vpop.permute.xlu0 %636 }
 0x31b   : > { %v624_v23 = vpop.permute.xlu1 %623 }
 0x31c   : > { %v626_v25 = vsel %vm351_vm8, %v622_v22, %v624_v23 }
 0x31d   : > { %630 = vst [vmem:[#allocation4 + $0x8] sm:$0xf0] %v626_v25 }
 0x31e   : > { %v698_v27 = vpop.permute.xlu0 %697 }
 0x31f   : > { %v747_v26 = vpop.permute.xlu1 %746 }
 0x322   : > { %v745_v29 = vpop.permute.xlu0 %744 }
 0x323   : > { %v658_v28 = vpop.permute.xlu1 %657  ;;  %v749_v32 = vsel %vm480_vm9, %v745_v29, %v747_v26 }
 0x324   : > { %v661_v30 = vsel %vm389_vm10, %v656_v20, %v658_v28  ;;  %v662_v31 = vsel %vm389_vm10, %v658_v28, %v660_v14  ;;  %753 = vst [vmem:[#allocation4 + $0x38] sm:$0xf0] %v749_v32  ;;  %v775_v63 = vld [vmem:[#allocation4 + $0x8] sm:$0xff]  ;;  %v856_v28 = vcombine.high %v1044_v1, %v1044_v1 }
 0x325   : > { %v665_v33 = vsel %vm1065_vm6, %v661_v30, 0.0  ;;  %v666_v34 = vsel %vm1073_vm7, %v662_v31, 0.0 }
 0x326   : > { %v669_v35 = vrot.slane %v665_v33, 4  ;;  %v670_v36 = vrot.slane %v666_v34, 4  ;;  %v681_v37 = vpop.permute.xlu0 %680 }
 0x327   : > { %v620_v38 = vpop.permute.xlu1 %619 }
 0x328   : > { %673 = vst [vmem:[#allocation4 + $0x10] sm:$0xf0] %v669_v35  ;;  %674 = vst [vmem:[#allocation4 + $0x18] sm:$0xf0] %v670_v36  ;;  %v625_v39 = vsel %vm351_vm8, %v620_v38, %v622_v22 }
 0x329   : > { %629 = vst [vmem:[#allocation4] sm:$0xf0] %v625_v39 }
 0x32a   : > { %v639_v40 = vpop.permute.xlu0 %638 }
 0x32b   : > { %v725_v41 = vpop.permute.xlu1 %724  ;;  %v642_v42 = vsel %vm369_vm11, %v637_v24, %v639_v40  ;;  %v643_v43 = vsel %vm369_vm11, %v639_v40, %v641_v16 }
 0x32c   : > { %v728_v44 = vsel %vm459_vm12, %v723_v21, %v725_v41  ;;  %v729_v45 = vsel %vm459_vm12, %v725_v41, %v727_v17  ;;  %v646_v46 = vsel %vm1120_vm13, %v642_v42, 0.0  ;;  %v647_v47 = vsel %vm1126_vm14, %v643_v43, 0.0 }
 0x32d   : > { %v732_v48 = vsel %vm1065_vm6, %v728_v44, 0.0  ;;  %v733_v49 = vsel %vm1073_vm7, %v729_v45, 0.0  ;;  %648 = vst [vmem:[#allocation4 + $0x10] sm:$0xf] %v646_v46  ;;  %649 = vst [vmem:[#allocation4 + $0x18] sm:$0xf] %v647_v47 }
 0x32e   : > { %734 = vst [vmem:[#allocation4 + $0x30] sm:$0xf] %v732_v48  ;;  %735 = vst [vmem:[#allocation4 + $0x38] sm:$0xf] %v733_v49  ;;  %v700_v50 = vpop.permute.xlu0 %699 }
 0x32f   : > { %v683_v51 = vpop.permute.xlu1 %682  ;;  %v703_v52 = vsel %vm433_vm15, %v698_v27, %v700_v50  ;;  %v704_v53 = vsel %vm433_vm15, %v700_v50, %v702_v18 }
 0x330   : > { %v686_v56 = vsel %vm415_vm0, %v681_v37, %v683_v51  ;;  %v687_v57 = vsel %vm415_vm0, %v683_v51, %v685_v19  ;;  %v707_v13 = vsel %vm1120_vm13, %v703_v52, 0.0  ;;  %v708_v15 = vsel %vm1126_vm14, %v704_v53, 0.0  ;;  %v774_v2 = vld [vmem:[#allocation4] sm:$0xff] }
 0x331   : > { %690 = vst [vmem:[#allocation4 + $0x20] sm:$0xf] %v686_v56  ;;  %691 = vst [vmem:[#allocation4 + $0x28] sm:$0xf] %v687_v57  ;;  %v711_v58 = vrot.slane %v707_v13, 4  ;;  %v712_v59 = vrot.slane %v708_v15, 4 }
 0x332   : > { %v760_v60 = vpop.permute.xlu0 %759 }
 0x333   : > { %v743_v61 = vpop.permute.xlu1 %742  ;;  %715 = vst [vmem:[#allocation4 + $0x20] sm:$0xf0] %v711_v58  ;;  %716 = vst [vmem:[#allocation4 + $0x28] sm:$0xf0] %v712_v59 }
 0x334   : > { %v748_v62 = vsel %vm480_vm9, %v743_v61, %v745_v29  ;;  %v777_v0 = vld [vmem:[#allocation4 + $0x18] sm:$0xff]  ;;  %v776_v3 = vld [vmem:[#allocation4 + $0x10] sm:$0xff] }
 0x335   : > { %752 = vst [vmem:[#allocation4 + $0x30] sm:$0xf0] %v748_v62  ;;  %v785_v4 = vpack.c.bf16 %v777_v0, %v775_v63  ;;  %v784_v6 = vpack.c.bf16 %v776_v3, %v774_v2  ;;  %v781_v14 = vld [vmem:[#allocation4 + $0x38] sm:$0xff] }
 0x336   : > { %v764_v5 = vpop.permute.xlu0 %763 }
 0x337   : > { %v762_v7 = vpop.permute.xlu1 %761  ;;  %799 = vmatprep.subr.bf16.mxu1 %v785_v4 }
 0x338   : > { %v765_v8 = vsel %vm1274_vm3, %v760_v60, %v762_v7  ;;  %v766_v9 = vsel %vm1275_vm4, %v762_v7, %v764_v5  ;;  %800 = vmatpush1.bf16.msra.mxu1 %v784_v6 }
 0x339   : > { %v769_v10 = vsel %vm1120_vm13, %v765_v8, 0.0  ;;  %v770_v11 = vsel %vm1126_vm14, %v766_v9, 0.0 }
 0x33a   : > { %771 = vst [vmem:[#allocation4 + $0x40] sm:$0xf] %v769_v10  ;;  %772 = vst [vmem:[#allocation4 + $0x48] sm:$0xf] %v770_v11  ;;  %v779_v12 = vld [vmem:[#allocation4 + $0x28] sm:$0xff]  ;;  %v778_v16 = vld [vmem:[#allocation4 + $0x20] sm:$0xff] }
 0x33b   : > { %v787_v17 = vpack.c.bf16 %v781_v14, %v779_v12 }
 0x33c   : > { %v780_v18 = vld [vmem:[#allocation4 + $0x30] sm:$0xff] }
 0x33d   : > { %v786_v19 = vpack.c.bf16 %v780_v18, %v778_v16  ;;  %801 = vmatprep.subr.bf16.mxu1 %v787_v17 }
 0x33f   : > { %802 = vmatpush1.bf16.msra.mxu1 %v786_v19 }
 0x341   : > { %v783_v20 = vld [vmem:[#allocation4 + $0x48] sm:$0xf]  ;;  %v782_v21 = vld [vmem:[#allocation4 + $0x40] sm:$0xf] }
 0x342   : > { %v789_v22 = vpack.c.bf16 %v783_v20, %v783_v20  ;;  %v788_v23 = vpack.c.bf16 %v782_v21, %v782_v21 }
 0x344   : > { %933 = vmatprep.subr.msk.bf16.mxu1 %vm528_vm2, %v789_v22  ;;  %v794_v54 = vsel %vm528_vm2, %v788_v23, 0 }
 0x345   : > { %804 = vmatpush1.bf16.msra.mxu1 %v794_v54 }
 0x347   : > { %v852_v29 = vpop.permute.xlu0 %851 }
 0x348   : > { %934 = vmatmul.mubr.msk.bf16.vlgmr.msra.gmra.mrb[0].mxu1 %vm524_vm1, %v773_v55  ;;  %v844_v24 = vpop.permute.xlu1 %843 }
 0x41b   : > { %v833_v25 = vpop.f32.mrb[0].mxu1 }
 0x41c   : > { %v846_v26 = vmul.f32 %v844_v24, %v833_v25  ;;  %v835_v27 = vpop.f32.mrb[1].mxu1 }
 0x41d   : > { %v847_v30 = vmul.f32 %v844_v24, %v835_v27  ;;  %v837_v31 = vpop.f32.mrb[2].mxu1 }
 0x41e   : > { %v854_v32 = vadd.f32 %v852_v29, %v846_v26  ;;  %v838_v33 = vpop.f32.mrb[3].mxu1 }
 0x41f   : > { %v855_v34 = vadd.f32 %v852_v29, %v847_v30 }
 0x420   : > { %v858_v35 = vadd.f32 %v854_v32, %v1044_v1 }
 0x421   : > { %v859_v36 = vadd.f32 %v856_v28, %v855_v34 }
 0x422   : > { %v860_v37 = vmax.f32 %v858_v35, 0.0 }
 0x423   : > { %v861_v38 = vmax.f32 %v859_v36, 0.0 }
 0x425   : > { %v864_v39 = vcombine.low %v860_v37, %v861_v38 }
 0x427   : > { %866 = vst [vmem:[%s278_s10] sm:$0xff] %v864_v39 }
 0x428 PF: > { %s17_s24 = sadd.s32 1, %s975_s24  }
 0x429   : > { %p14_p4 = scmp.ge.s32.totalorder %s17_s24, 4  }
 0x42b   :  { %16 = sbr.rel (!%p14_p4) target bundleno = 1 (0x1), region = 78 }

</bundles_post_ra>
